<compile_context>
chip_gen: v5e
topology: v5e:2x2
jax: 0.10.0
libtpu: 0.0.40
codegen_flags: <defaults>
</compile_context>

<pallas_src>
import jax
import jax.numpy as jnp
from jax.experimental import pallas as pl
from jax.experimental.pallas import tpu as pltpu


def _round_up(x: int, m: int) -> int:
    return ((x + m - 1) // m) * m


def _balanced_tile(dim: int, cap: int, align: int):
    """Tile size <= cap, multiple of `align`, minimizing total zero padding.

    Returns (tile, padded_dim) with padded_dim % tile == 0.
    `cap` must be a multiple of `align`.
    """
    dim_aligned = _round_up(dim, align)
    if dim_aligned <= cap:
        return dim_aligned, dim_aligned
    n_tiles = -(-dim_aligned // cap)
    tile = _round_up(-(-dim_aligned // n_tiles), align)
    return tile, tile * n_tiles


def _pad2(a, rows: int, cols: int):
    pr, pc = rows - a.shape[0], cols - a.shape[1]
    if pr == 0 and pc == 0:
        return a
    return jnp.pad(a, ((0, pr), (0, pc)))


def _lagrange_single_block_kernel(x_ref, w_ref, mu_ref, a_ref, b_ref, o_ref):
    """Fast path for grid == (1,1,1): no scratch, no pl.when branches."""
    out = jnp.dot(x_ref[...], w_ref[...], preferred_element_type=jnp.float32)
    out = out + jnp.dot(mu_ref[...], a_ref[...], preferred_element_type=jnp.float32)
    out = out + b_ref[...].astype(jnp.float32)  # (1, tn) broadcast, f32 add
    o_ref[...] = out.astype(o_ref.dtype)


def _lagrange_tiled_kernel(x_ref, w_ref, mu_ref, a_ref, b_ref, o_ref, acc_ref):
    """acc += x @ W over K axis; on last K step add mu @ A + bias and store."""

    @pl.when(pl.program_id(2) == 0)
    def _():
        acc_ref[...] = jnp.zeros_like(acc_ref)

    acc_ref[...] += jnp.dot(
        x_ref[...], w_ref[...], preferred_element_type=jnp.float32
    )

    @pl.when(pl.program_id(2) == pl.num_programs(2) - 1)
    def _():
        out = acc_ref[...] + jnp.dot(
            mu_ref[...], a_ref[...], preferred_element_type=jnp.float32
        )
        out = out + b_ref[...].astype(jnp.float32)  # bias added in f32
        o_ref[...] = out.astype(o_ref.dtype)


def lagrange_forward(x, W, bias, mu, A, *, tm_cap=512, tn_cap=512, tk_cap=1024):
    """Computes x @ W + bias + mu @ A with a fused Pallas TPU kernel."""
    batch, hidden = x.shape
    hidden_w, out_size = W.shape
    assert hidden == hidden_w
    c_size, out_size_a = A.shape
    assert out_size == out_size_a
    assert mu.shape == (batch, c_size)
    assert bias.shape == (out_size,)
    # Do not silently downcast mu/A/bias (correctness-review item).
    assert W.dtype == x.dtype and mu.dtype == x.dtype
    assert A.dtype == x.dtype and bias.dtype == x.dtype

    # --- Balanced, alignment-aware tiling (minimizes zero padding) -------
    # M: sublane (8-aligned for f32); N, K: lane (128-aligned).
    tm, Mp = _balanced_tile(batch, tm_cap, 8)
    tn, Np = _balanced_tile(out_size, tn_cap, 128)
    tk, Kp = _balanced_tile(hidden, tk_cap, 128)

    # Zero padding only where shapes are not already aligned.
    xp = _pad2(x, Mp, Kp)
    Wp = _pad2(W, Kp, Np)
    mup = _pad2(mu, Mp, c_size)          # c_size kept as full dim (tiny)
    Ap = _pad2(A, c_size, Np)
    bp = _pad2(bias.reshape(1, out_size), 1, Np)

    grid = (Mp // tm, Np // tn, Kp // tk)

    itemsize = jnp.dtype(x.dtype).itemsize
    cost = pl.CostEstimate(
        flops=2 * Mp * Kp * Np + 2 * Mp * c_size * Np,
        transcendentals=0,
        bytes_accessed=(Mp * Kp + Kp * Np + Mp * c_size + c_size * Np + Np + Mp * Np)
        * itemsize,
    )

    # Explicit VMEM limit from the actual double-buffered tile footprint,
    # clamped to stay safe on v7x (64 MiB physical per TC).
    vmem_bytes = (
        2 * (tm * tk + tk * tn + tm * c_size + c_size * tn + tn + tm * tn) * itemsize
        + tm * tn * 4  # f32 accumulator scratch
    )
    vmem_limit = int(min(48 << 20, max(16 << 20, vmem_bytes + (8 << 20))))

    if grid == (1, 1, 1):
        # Single-block fast path (toy / sub-tile shapes): whole arrays in VMEM.
        out_padded = pl.pallas_call(
            _lagrange_single_block_kernel,
            out_shape=jax.ShapeDtypeStruct((Mp, Np), x.dtype),
            compiler_params=pltpu.CompilerParams(vmem_limit_bytes=vmem_limit),
            cost_estimate=cost,
        )(xp, Wp, mup, Ap, bp)
    else:
        out_padded = pl.pallas_call(
            _lagrange_tiled_kernel,
            out_shape=jax.ShapeDtypeStruct((Mp, Np), x.dtype),
            grid_spec=pltpu.PrefetchScalarGridSpec(
                num_scalar_prefetch=0,
                grid=grid,
                in_specs=[
                    pl.BlockSpec((tm, tk), lambda i, j, k: (i, k)),
                    pl.BlockSpec((tk, tn), lambda i, j, k: (k, j)),
                    pl.BlockSpec((tm, c_size), lambda i, j, k: (i, 0)),
                    pl.BlockSpec((c_size, tn), lambda i, j, k: (0, j)),
                    pl.BlockSpec((1, tn), lambda i, j, k: (0, j)),
                ],
                out_specs=pl.BlockSpec((tm, tn), lambda i, j, k: (i, j)),
                scratch_shapes=[pltpu.VMEM((tm, tn), jnp.float32)],
            ),
            compiler_params=pltpu.CompilerParams(
                dimension_semantics=("parallel", "parallel", "arbitrary"),
                vmem_limit_bytes=vmem_limit,
            ),
            cost_estimate=cost,
        )(xp, Wp, mup, Ap, bp)

    return out_padded[:batch, :out_size]


if __name__ == "__main__":
    key = jax.random.PRNGKey(0)

    # ---- Toy shapes consistent with the module (single-block fast path) ----
    batch, hidden_size, constraint_size, output_size = 8, 32, 8, 16
    kx, kw, kb, kmu, ka, key = jax.random.split(key, 6)
    x = jax.random.normal(kx, (batch, hidden_size), dtype=jnp.float32)
    W = jax.random.normal(kw, (hidden_size, output_size), dtype=jnp.float32)
    bias = jax.random.normal(kb, (output_size,), dtype=jnp.float32)
    mu = jax.random.normal(kmu, (batch, constraint_size), dtype=jnp.float32)
    A = jax.random.normal(ka, (constraint_size, output_size), dtype=jnp.float32)

    out = jax.block_until_ready(lagrange_forward(x, W, bias, mu, A))
    ref = x @ W + bias + mu @ A
    assert out.shape == (batch, output_size)
    assert jnp.allclose(out, ref, atol=1e-4, rtol=1e-4)

    # ---- Larger shapes to exercise the tiled multi-block path ----
    b2, h2, c2, o2 = 640, 2304, 8, 640
    kx, kw, kb, kmu, ka, key = jax.random.split(key, 6)
    x2 = jax.random.normal(kx, (b2, h2), dtype=jnp.float32)
    W2 = jax.random.normal(kw, (h2, o2), dtype=jnp.float32)
    bias2 = jax.random.normal(kb, (o2,), dtype=jnp.float32)
    mu2 = jax.random.normal(kmu, (b2, c2), dtype=jnp.float32)
    A2 = jax.random.normal(ka, (c2, o2), dtype=jnp.float32)

    out2 = jax.block_until_ready(lagrange_forward(x2, W2, bias2, mu2, A2))
    ref2 = x2 @ W2 + bias2 + mu2 @ A2
    assert out2.shape == (b2, o2)
    assert jnp.allclose(out2, ref2, atol=2e-3, rtol=2e-3)

    # TODO(synk): `solver` / `line_search` (data-dependent while loop and
    # recursive step-size halving over mu) are host-side control flow around
    # repeated forward calls; not implemented as a kernel.

    print("KERNEL_OK")
</pallas_src>

<mosaic_0001>
module attributes {stable_mosaic.version = 11 : i64} {
  func.func @_lagrange_single_block_kernel(%arg0: memref<8x128xf32, #tpu.memory_space<vmem>>, %arg1: memref<128x128xf32, #tpu.memory_space<vmem>>, %arg2: memref<8x8xf32, #tpu.memory_space<vmem>>, %arg3: memref<8x128xf32, #tpu.memory_space<vmem>>, %arg4: memref<1x128xf32, #tpu.memory_space<vmem>>, %arg5: memref<8x128xf32, #tpu.memory_space<vmem>>) attributes {dimension_semantics = [], scalar_prefetch = 0 : i64, scratch_operands = 0 : i64, tpu.core_type = #tpu.core_type<tc>} {
    %c0 = arith.constant 0 : index
    %c0_0 = arith.constant 0 : index
    %0 = vector.load %arg0[%c0, %c0_0] : memref<8x128xf32, #tpu.memory_space<vmem>>, vector<8x128xf32>
    %c0_1 = arith.constant 0 : index
    %c0_2 = arith.constant 0 : index
    %1 = vector.load %arg1[%c0_1, %c0_2] : memref<128x128xf32, #tpu.memory_space<vmem>>, vector<128x128xf32>
    %cst = arith.constant dense<0.000000e+00> : vector<8x128xf32>
    %2 = tpu.matmul %0, %1, %cst {dimension_numbers = #tpu.dot_dimension_numbers<[1], [0], [0], [1], [0, 0, 1, 1], [], []>} : vector<8x128xf32>, vector<128x128xf32>, vector<8x128xf32> -> vector<8x128xf32>
    %c0_3 = arith.constant 0 : index
    %c0_4 = arith.constant 0 : index
    %3 = vector.load %arg2[%c0_3, %c0_4] : memref<8x8xf32, #tpu.memory_space<vmem>>, vector<8x8xf32>
    %c0_5 = arith.constant 0 : index
    %c0_6 = arith.constant 0 : index
    %4 = vector.load %arg3[%c0_5, %c0_6] : memref<8x128xf32, #tpu.memory_space<vmem>>, vector<8x128xf32>
    %cst_7 = arith.constant dense<0.000000e+00> : vector<8x128xf32>
    %5 = tpu.matmul %3, %4, %cst_7 {dimension_numbers = #tpu.dot_dimension_numbers<[1], [0], [0], [1], [0, 0, 1, 1], [], []>} : vector<8x8xf32>, vector<8x128xf32>, vector<8x128xf32> -> vector<8x128xf32>
    %6 = arith.addf %2, %5 : vector<8x128xf32>
    %c0_8 = arith.constant 0 : index
    %c0_9 = arith.constant 0 : index
    %7 = vector.load %arg4[%c0_8, %c0_9] : memref<1x128xf32, #tpu.memory_space<vmem>>, vector<1x128xf32>
    %8 = vector.broadcast %7 : vector<1x128xf32> to vector<8x128xf32>
    %9 = arith.addf %6, %8 : vector<8x128xf32>
    %c0_10 = arith.constant 0 : index
    %c0_11 = arith.constant 0 : index
    %10 = vector.load %arg5[%c0_10, %c0_11] : memref<8x128xf32, #tpu.memory_space<vmem>>, vector<8x128xf32>
    tpu.vector_store %arg5[%c0_10, %c0_11], %9 {strides = array<i32>} : memref<8x128xf32, #tpu.memory_space<vmem>>, vector<8x128xf32>,
    return
  }
}

</mosaic_0001>

<bundles_post_ra>
// kernel: tpu_custom_call.1
= control target key start
LH: loop header
LB: loop body
LE: loop exit
PB: predicated region body
PF: predicated region fallthrough
CT: control target
= control target key end

     0   :  { %10 = vsyncpa [#allocation3], 0  ;;  %s358_s0 = inlined_call_operand.hbm [shape: f32[8,128], index: 0, kind: input, shape index: {}]   ;;  %s359_s1 = inlined_call_operand.hbm [shape: f32[128,128], index: 1, kind: input, shape index: {}]   ;;  %s360_s2 = inlined_call_operand.hbm [shape: f32[8,8], index: 2, kind: input, shape index: {}]   ;;  %s361_s3 = inlined_call_operand.hbm [shape: f32[8,128], index: 3, kind: input, shape index: {}]   ;;  %s362_s4 = inlined_call_operand.vmem [shape: f32[1,128], index: 4, kind: input, shape index: {}]   ;;  %s363_s5 = inlined_call_operand.hbm [shape: f32[8,128], index: 5, kind: output, shape index: {}]  }
   0x1   :  { %11 = vsyncpa [#allocation6], 0 }
   0x2   :  { %12 = vsyncpa [#allocation9], 0  ;;  %s29_s20 = sshll.u32 %s359_s1, 4  ;;  %s30_s20 = int_to_ptr.hbm [resolvable:$true] %s29_s20 }
   0x3   :  { %13 = vsyncpa [#allocation4], 0  ;;  %s303_s21 = smov [#allocation5]   ;;  %s19_s25 = sshll.u32 %s358_s0, 4  ;;  %s20_s25 = int_to_ptr.hbm [resolvable:$true] %s19_s25 }
   0x4   :  { %s31_s22 = sshll.u32 %s303_s21, 4  ;;  %s304_s26 = smov 128   ;;  %s32_s22 = int_to_ptr.vmem [resolvable:$true] %s31_s22 }
   0x5   :  { %s305_s27 = smov 8   ;;  %s306_s28 = smov [#allocation2]  }
   0x6   :  { %37 = dma.hbm_to_vmem [thread:$0]  %s30_s20, 2048, %s32_s22, [#allocation6], %s304_s26, %s304_s26, %s305_s27  }
   0x7   :  { %s21_s29 = sshll.u32 %s306_s28, 4  ;;  %s43_s7 = sshll.u32 %s360_s2, 4  ;;  %s22_s29 = int_to_ptr.vmem [resolvable:$true] %s21_s29  ;;  %s44_s7 = int_to_ptr.hbm [resolvable:$true] %s43_s7 }
   0x8   :  { %24 = dma.hbm_to_vmem [thread:$0]  %s20_s25, 128, %s22_s29, [#allocation3]  }
   0x9   :  { %s54_s9 = sshll.u32 %s361_s3, 4  ;;  %s307_s10 = smov [#allocation7]   ;;  %s55_s9 = int_to_ptr.hbm [resolvable:$true] %s54_s9 }
   0xa   :  { %s45_s11 = sshll.u32 %s307_s10, 4  ;;  %s308_s0 = smov [#allocation8]   ;;  %s46_s11 = int_to_ptr.vmem [resolvable:$true] %s45_s11 }
   0xb   :  { %48 = dma.hbm_to_vmem [thread:$0]  %s44_s7, 128, %s46_s11, [#allocation6]  }
   0xc   :  { %s56_s12 = sshll.u32 %s308_s0, 4  ;;  %s57_s12 = int_to_ptr.vmem [resolvable:$true] %s56_s12 }
   0xd   :  { %59 = dma.hbm_to_vmem [thread:$0]  %s55_s9, 128, %s57_s12, [#allocation9]  }
   0xe   :  { %295 = dma.done.wait [#allocation3], 128  }
   0xf   :  { %296 = vsyncadd [#allocation3], 4294967168 }
  0x10   :  { %297 = dma.done.wait [#allocation6], 2176  }
  0x11   :  { %298 = vsyncadd [#allocation6], 4294965120 }
  0x12   :  { %299 = dma.done.wait [#allocation9], 128  }
  0x13   :  { %300 = vsyncadd [#allocation9], 4294967168  ;;  %v94_v0 = vld [vmem:[#allocation5 + $0x78] sm:$0xff]  ;;  %v93_v1 = vld [vmem:[#allocation5 + $0x70] sm:$0xff]  ;;  %vm97_vm0 = vcmask 64512   ;;  %s309_s13 = smov [#allocation10]  }
  0x14   :  { %121 = vmatpush.msra.mxu1 %v94_v0  ;;  %v92_v2 = vld [vmem:[#allocation5 + $0x68] sm:$0xff]  ;;  %v91_v3 = vld [vmem:[#allocation5 + $0x60] sm:$0xff]  ;;  %v90_v6 = vld [vmem:[#allocation5 + $0x58] sm:$0xff]  ;;  %s152_s14 = sshll.u32 %s309_s13, 4  ;;  %s154_s17 = sshll.u32 %s363_s5, 4  ;;  %s153_s14 = int_to_ptr.vmem [resolvable:$true] %s152_s14  ;;  %s155_s17 = int_to_ptr.hbm [resolvable:$true] %s154_s17 }
  0x15   :  { %v96_v4 = vld [vmem:[#allocation8] sm:$0xff]  ;;  %v95_v5 = vld [vmem:[#allocation7] sm:$0xff]  ;;  %v89_v7 = vld [vmem:[#allocation5 + $0x50] sm:$0xff] }
  0x16   :  { %122 = vmatpush.msra.mxu1 %v93_v1  ;;  %116 = vmatpush.msra.mxu0 %v96_v4  ;;  %v88_v8 = vld [vmem:[#allocation5 + $0x48] sm:$0xff]  ;;  %v87_v9 = vld [vmem:[#allocation5 + $0x40] sm:$0xff]  ;;  %v86_v10 = vld [vmem:[#allocation5 + $0x38] sm:$0xff] }
  0x17   :  { %166 = vmatmul.msk.f32.vlgmr.msra.gmra.mxu0 %vm97_vm0, %v95_v5  ;;  %v85_v11 = vld [vmem:[#allocation5 + $0x30] sm:$0xff]  ;;  %v84_v12 = vld [vmem:[#allocation5 + $0x28] sm:$0xff]  ;;  %v83_v13 = vld [vmem:[#allocation5 + $0x20] sm:$0xff] }
  0x18   :  { %123 = vmatpush.msra.mxu1 %v92_v2  ;;  %v82_v14 = vld [vmem:[#allocation5 + $0x18] sm:$0xff]  ;;  %v81_v15 = vld [vmem:[#allocation5 + $0x10] sm:$0xff]  ;;  %v80_v16 = vld [vmem:[#allocation5 + $0x8] sm:$0xff] }
  0x19   :  { %v79_v17 = vld [vmem:[#allocation5] sm:$0xff]  ;;  %v78_v18 = vld [vmem:[#allocation2] sm:$0xff] }
  0x1a   :  { %124 = vmatpush.msra.mxu1 %v91_v3  ;;  %v174_v20 = vld [vmem:[%s362_s4] ss:$0 sm:$0xff] }
  0x1c   :  { %125 = vmatpush.msra.mxu1 %v90_v6 }
  0x1e   :  { %126 = vmatpush.msra.mxu1 %v89_v7 }
  0x20   :  { %127 = vmatpush.msra.mxu1 %v88_v8 }
  0x22   :  { %128 = vmatpush.msra.mxu1 %v87_v9 }
  0x24   :  { %129 = vmatpush.msra.mxu1 %v86_v10 }
  0x26   :  { %130 = vmatpush.msra.mxu1 %v85_v11 }
  0x28   :  { %131 = vmatpush.msra.mxu1 %v84_v12 }
  0x2a   :  { %132 = vmatpush.msra.mxu1 %v83_v13 }
  0x2c   :  { %133 = vmatpush.msra.mxu1 %v82_v14 }
  0x2e   :  { %134 = vmatpush.msra.mxu1 %v81_v15 }
  0x30   :  { %135 = vmatpush.msra.mxu1 %v80_v16 }
  0x32   :  { %136 = vmatpush.msra.mxu1 %v79_v17 }
  0x33   :  { %137 = vmatmul.f32.vlgmr.msra.gmra.mxu1 %v78_v18 }
  0x94   :  { %v118_v19 = vpop.f32.mrf.mxu0 }
  0xb0   :  { %v138_v21 = vpop.f32.mrf.mxu1 }
  0xb1   :  { %v139_v22 = vadd.f32 %v138_v21, %v118_v19 }
  0xb3   :  { %v145_v23 = vadd.f32 %v174_v20, %v139_v22 }
  0xb5   :  { %146 = vst [vmem:[#allocation10] sm:$0xff] %v145_v23 }
  0xb6   :  { %157 = dma.vmem_to_hbm [thread:$0]  %s153_s14, 128, %s155_s17, [#allocation4]  }
  0xb7   :  { %301 = dma.done.wait [#allocation4], 128  }
  0xb8   :  { %302 = vsyncadd [#allocation4], 4294967168 }
  0xb9   :  { %162 = vsyncpa [#allocation3], 1 }
  0xba   :  { %163 = vsyncpa [#allocation6], 1 }
  0xbb   :  { %164 = vsyncpa [#allocation9], 1 }
  0xbc   :  { %165 = vsyncpa [#allocation4], 1 }

</bundles_post_ra>
